<compile_context>
chip_gen: v7x
topology: tpu7x:2x2x1
jax: 0.10.0
libtpu: 0.0.40
codegen_flags: <defaults>
</compile_context>

<pallas_src>
import functools

import jax
import jax.numpy as jnp
from jax.experimental import pallas as pl
from jax.experimental.pallas import tpu as pltpu


# ---------------------------------------------------------------------------
# Kernels
# ---------------------------------------------------------------------------
def _ffn_kernel_accout(x_ref, w1_ref, b1_ref, w2_ref, o_ref, *, mm_dtype):
    """Non-residual path, f32 output: accumulate straight into o_ref."""
    k = pl.program_id(1)

    @pl.when(k == 0)
    def _():
        o_ref[...] = jnp.zeros_like(o_ref)

    # h_k = x @ W1[:, k-slab] + b1[k-slab]   (bf16 MXU operands, f32 accumulation)
    h = jnp.dot(x_ref[...].astype(mm_dtype), w1_ref[...],
                preferred_element_type=jnp.float32)
    h = h + b1_ref[...]
    # TODO(synk): training-mode dropout (pltpu.prng_random_bits mask) omitted; eval-mode identity.
    o_ref[...] += jnp.dot(h.astype(mm_dtype), w2_ref[...],
                          preferred_element_type=jnp.float32)


def _ffn_kernel_scratch(x_ref, w1_ref, b1_ref, w2_ref, o_ref, acc_ref, *, mm_dtype):
    """Non-residual path, non-f32 output: f32 VMEM accumulator, cast at the end."""
    k = pl.program_id(1)

    @pl.when(k == 0)
    def _():
        acc_ref[...] = jnp.zeros_like(acc_ref)

    h = jnp.dot(x_ref[...].astype(mm_dtype), w1_ref[...],
                preferred_element_type=jnp.float32)
    h = h + b1_ref[...]
    acc_ref[...] += jnp.dot(h.astype(mm_dtype), w2_ref[...],
                            preferred_element_type=jnp.float32)

    @pl.when(k == pl.num_programs(1) - 1)
    def _():
        o_ref[...] = acc_ref[...].astype(o_ref.dtype)


def _ffn_residual_kernel(x_ref, w1_ref, b1_ref, w2_ref, g_ref, beta_ref,
                         o_ref, acc_ref, *, mm_dtype):
    """Residual path: fused residual add + LayerNorm epilogue (all f32 / VPU)."""
    k = pl.program_id(1)

    @pl.when(k == 0)
    def _():
        acc_ref[...] = jnp.zeros_like(acc_ref)

    h = jnp.dot(x_ref[...].astype(mm_dtype), w1_ref[...],
                preferred_element_type=jnp.float32)
    h = h + b1_ref[...]
    acc_ref[...] += jnp.dot(h.astype(mm_dtype), w2_ref[...],
                            preferred_element_type=jnp.float32)

    @pl.when(k == pl.num_programs(1) - 1)
    def _():
        # Residual add with the *un-cast* x (dropout = identity), then LayerNorm.
        z = x_ref[...].astype(jnp.float32) + acc_ref[...]
        mean = jnp.mean(z, axis=-1, keepdims=True)
        cz = z - mean
        var = jnp.mean(cz * cz, axis=-1, keepdims=True)
        zn = cz * jax.lax.rsqrt(var + 1e-5)            # nn.LayerNorm default eps
        o_ref[...] = (zn * g_ref[...] + beta_ref[...]).astype(o_ref.dtype)


# ---------------------------------------------------------------------------
# Per-generation config / tile planning
# ---------------------------------------------------------------------------
@functools.lru_cache(maxsize=1)
def _tpu_config():
    """(vmem_capacity_bytes, row_tile_cap) for the current chip generation."""
    vmem_cap = 128 << 20
    try:
        vmem_cap = int(pltpu.get_tpu_info().vmem_capacity_bytes)
    except Exception:
        pass
    kind = ""
    try:
        kind = jax.devices()[0].device_kind.lower()
    except Exception:
        pass
    if ("v5 lite" in kind) or ("v5e" in kind) or ("v5litepod" in kind):
        tm_cap = 256        # v5e: ~compute-bound at 256; spend VMEM on resident weights
    elif ("v6" in kind) or ("trillium" in kind):
        tm_cap = 1024       # v6e needs tm >= ~650 rows/weight-pass for MXU roofline
    else:
        tm_cap = 512        # v7x (~320 needed) and safe default
    return vmem_cap, tm_cap


def _round_up(x, m):
    return ((x + m - 1) // m) * m


def _working_set(tm, tk, hidden, out, x_bytes, mm_bytes, out_bytes,
                 needs_acc, residual):
    """VMEM bytes for one grid step (double buffers included)."""
    b = 2 * tm * hidden * x_bytes           # x tile
    b += 2 * hidden * tk * mm_bytes         # W1 k-slab
    b += 2 * max(tk, 128) * 4               # b1 k-slab (f32, lane-padded)
    b += 2 * tk * out * mm_bytes            # W2 k-slab
    b += 2 * tm * out * out_bytes           # output tile
    if needs_acc:
        b += tm * out * 4                   # f32 accumulator scratch
    b += tm * tk * 4                        # live f32 h slab in the body
    if residual:
        b += 2 * 2 * out * 4                # LayerNorm gamma/beta
    return b


def _plan_tiles(n, hidden, two_h, out, x_bytes, mm_bytes, out_bytes,
                needs_acc, residual, plan_budget, tm_cap):
    """Pick (tm, tk, padded two_h). Prefers the largest row tile that fits,
    and the resident-weights fast path (tk == two_h) when weights fit VMEM."""
    if n < 128:
        tm_cands = [n]                       # single full-extent block (always legal)
    else:
        tm_cands = [c for c in (1024, 768, 512, 384, 256, 192, 128)
                    if c <= min(tm_cap, n)]
        if not tm_cands:
            tm_cands = [128]

    def ws(tm, tk):
        return _working_set(tm, tk, hidden, out, x_bytes, mm_bytes, out_bytes,
                            needs_acc, residual)

    for tm in tm_cands:
        # Fast path: whole W1/W2 resident across all row tiles (one HBM pass).
        if ws(tm, two_h) <= plan_budget:
            return tm, two_h, two_h
        for tk in (512, 256, 128):
            if tk < two_h and ws(tm, tk) <= plan_budget:
                return tm, tk, _round_up(two_h, tk)

    # Last resort: smallest row tile, smallest slab.
    tm = tm_cands[-1]
    if two_h <= 128:
        return tm, two_h, two_h
    return tm, 128, _round_up(two_h, 128)


# ---------------------------------------------------------------------------
# Wrapper
# ---------------------------------------------------------------------------
@functools.partial(jax.jit,
                   static_argnames=("residual", "matmul_dtype", "plan_vmem_bytes"))
def feed_forward(x, w1_t, b1, w2_t, ln_w, ln_b, *, residual=False,
                 matmul_dtype=jnp.bfloat16, plan_vmem_bytes=None):
    """x: [N, hidden]; w1_t: [hidden, 2*hidden]; b1: [2*hidden];
    w2_t: [2*hidden, out]; ln_w, ln_b: [out].
    plan_vmem_bytes: optional override of the VMEM budget used for tile
    planning (testing knob; the compiler limit always uses the real chip)."""
    N, hidden = x.shape
    two_h = w1_t.shape[1]
    out = w2_t.shape[1]
    out_dtype = x.dtype
    out_is_f32 = jnp.dtype(out_dtype) == jnp.dtype(jnp.float32)
    needs_acc = residual or not out_is_f32

    vmem_cap, tm_cap = _tpu_config()
    plan_cap = plan_vmem_bytes if plan_vmem_bytes is not None else vmem_cap
    plan_budget = int(plan_cap * 0.82)       # headroom for compiler temporaries

    x_bytes = jnp.dtype(x.dtype).itemsize
    mm_bytes = jnp.dtype(matmul_dtype).itemsize
    out_bytes = jnp.dtype(out_dtype).itemsize

    tm, tk, two_h_p = _plan_tiles(N, hidden, two_h, out, x_bytes, mm_bytes,
                                  out_bytes, needs_acc, residual,
                                  plan_budget, tm_cap)
    rows = pl.cdiv(N, tm)
    ksteps = two_h_p // tk

    # Weights cast to bf16 once (wrapper-side); bias / LN params stay f32.
    w1m = w1_t.astype(matmul_dtype)
    w2m = w2_t.astype(matmul_dtype)
    b1f = b1.astype(jnp.float32).reshape(1, two_h)
    if two_h_p != two_h:                     # zero-pad the intermediate dim: contributes 0
        pad = two_h_p - two_h
        w1m = jnp.pad(w1m, ((0, 0), (0, pad)))
        b1f = jnp.pad(b1f, ((0, 0), (0, pad)))
        w2m = jnp.pad(w2m, ((0, pad), (0, 0)))

    x_spec = pl.BlockSpec((tm, hidden), lambda i, k: (i, 0))
    w1_spec = pl.BlockSpec((hidden, tk), lambda i, k: (0, k))
    b1_spec = pl.BlockSpec((1, tk), lambda i, k: (0, k))
    w2_spec = pl.BlockSpec((tk, out), lambda i, k: (k, 0))
    o_spec = pl.BlockSpec((tm, out), lambda i, k: (i, 0))     # resident across k

    ws_bytes = _working_set(tm, tk, hidden, out, x_bytes, mm_bytes, out_bytes,
                            needs_acc, residual)
    vmem_limit = int(min(max(ws_bytes * 13 // 10 + (4 << 20), 32 << 20),
                         int(vmem_cap * 0.9)))                # honour v7x's 64 MiB
    compiler_params = pltpu.CompilerParams(
        dimension_semantics=("parallel", "arbitrary"),
        vmem_limit_bytes=vmem_limit,
    )

    if residual:
        assert out == hidden, "residual path requires out == hidden"
        ln_w_2d = ln_w.astype(jnp.float32).reshape(1, out)
        ln_b_2d = ln_b.astype(jnp.float32).reshape(1, out)
        ln_spec = pl.BlockSpec((1, out), lambda i, k: (0, 0))
        kernel = functools.partial(_ffn_residual_kernel, mm_dtype=matmul_dtype)
        in_specs = [x_spec, w1_spec, b1_spec, w2_spec, ln_spec, ln_spec]
        scratch = [pltpu.VMEM((tm, out), jnp.float32)]
        args = (x, w1m, b1f, w2m, ln_w_2d, ln_b_2d)
    elif out_is_f32:
        kernel = functools.partial(_ffn_kernel_accout, mm_dtype=matmul_dtype)
        in_specs = [x_spec, w1_spec, b1_spec, w2_spec]
        scratch = []                                          # accumulate in o_ref
        args = (x, w1m, b1f, w2m)
    else:
        kernel = functools.partial(_ffn_kernel_scratch, mm_dtype=matmul_dtype)
        in_specs = [x_spec, w1_spec, b1_spec, w2_spec]
        scratch = [pltpu.VMEM((tm, out), jnp.float32)]
        args = (x, w1m, b1f, w2m)

    return pl.pallas_call(
        kernel,
        out_shape=jax.ShapeDtypeStruct((N, out), out_dtype),
        grid_spec=pltpu.PrefetchScalarGridSpec(
            num_scalar_prefetch=0,
            grid=(rows, ksteps),
            in_specs=in_specs,
            out_specs=o_spec,
            scratch_shapes=scratch,
        ),
        compiler_params=compiler_params,
    )(*args)


# ---------------------------------------------------------------------------
# Deterministic parameter init (PyTorch-style uniform(-1/sqrt(fan_in), +))
# ---------------------------------------------------------------------------
def init_params(key, hidden, out, dtype=jnp.float32):
    k1, k2, k3 = jax.random.split(key, 3)
    bound1 = 1.0 / (hidden ** 0.5)
    bound2 = 1.0 / ((2 * hidden) ** 0.5)
    # Stored already transposed: [in, out].
    w1_t = jax.random.uniform(k1, (hidden, 2 * hidden), dtype, -bound1, bound1)
    b1 = jax.random.uniform(k2, (2 * hidden,), dtype, -bound1, bound1)
    w2_t = jax.random.uniform(k3, (2 * hidden, out), dtype, -bound2, bound2)
    ln_w = jnp.ones((out,), dtype)     # nn.LayerNorm init
    ln_b = jnp.zeros((out,), dtype)
    return w1_t, b1, w2_t, ln_w, ln_b


def _reference(x, w1_t, b1, w2_t, ln_w, ln_b, residual,
               matmul_dtype=jnp.bfloat16):
    """Pure-JAX reference with the same bf16-operand / f32-accumulate recipe."""
    h = jnp.dot(x.astype(matmul_dtype), w1_t.astype(matmul_dtype),
                preferred_element_type=jnp.float32) + b1.astype(jnp.float32)
    upd = jnp.dot(h.astype(matmul_dtype), w2_t.astype(matmul_dtype),
                  preferred_element_type=jnp.float32)
    if not residual:
        return upd.astype(x.dtype)
    z = x.astype(jnp.float32) + upd          # residual uses the un-cast x
    mean = z.mean(-1, keepdims=True)
    var = ((z - mean) ** 2).mean(-1, keepdims=True)
    y = (z - mean) * jax.lax.rsqrt(var + 1e-5) * ln_w + ln_b
    return y.astype(x.dtype)


def _check(x2d, params, residual, atol=2e-2, **kw):
    y = jax.block_until_ready(feed_forward(x2d, *params, residual=residual, **kw))
    y_ref = _reference(x2d, *params, residual=residual)
    assert y.shape == y_ref.shape, (y.shape, y_ref.shape)
    assert jnp.allclose(y, y_ref, atol=atol, rtol=atol), (
        float(jnp.max(jnp.abs(y - y_ref))))
    return y


if __name__ == "__main__":
    key = jax.random.PRNGKey(0)
    kx, kp, kx2, kp2 = jax.random.split(key, 4)

    # --- small shapes matching the module (batch=2, seq=8, hidden=32) -------
    batch, seq, hidden, out = 2, 8, 32, 32          # out == hidden -> residual path valid
    x = jax.random.normal(kx, (batch, seq, hidden), jnp.float32)
    params = init_params(kp, hidden, out)
    x2d = x.reshape(batch * seq, hidden)            # [N, hidden], N = batch*seq

    y = _check(x2d, params, residual=False)         # module default
    _ = _check(x2d, params, residual=True)          # fused residual + LayerNorm
    _ = y.reshape(batch, seq, out)                  # restore [batch, seq, out]

    # --- ragged N, resident-weights fast path (no wrapper pad/slice) --------
    n2, hidden2 = 200, 512
    x2 = jax.random.normal(kx2, (n2, hidden2), jnp.float32)
    params2 = init_params(kp2, hidden2, hidden2)
    _ = _check(x2, params2, residual=False)
    _ = _check(x2, params2, residual=True)

    # --- force the k-tiled reduction path (small planning budget) -----------
    _ = _check(x2, params2, residual=False, plan_vmem_bytes=4 << 20)
    _ = _check(x2, params2, residual=True, plan_vmem_bytes=4 << 20)

    print("KERNEL_OK")
</pallas_src>

<mosaic_0001>
module attributes {stable_mosaic.version = 11 : i64} {
  func.func @_ffn_kernel_accout(%arg0: i32, %arg1: i32, %arg2: memref<16x32xf32, #tpu.memory_space<vmem>>, %arg3: memref<32x64xbf16, #tpu.memory_space<vmem>>, %arg4: memref<1x64xf32, #tpu.memory_space<vmem>>, %arg5: memref<64x32xbf16, #tpu.memory_space<vmem>>, %arg6: memref<16x32xf32, #tpu.memory_space<vmem>>) attributes {dimension_semantics = [#tpu.dimension_semantics<parallel>, #tpu.dimension_semantics<arbitrary>], iteration_bounds = array<i64: 1, 1>, scalar_prefetch = 0 : i64, scratch_operands = 0 : i64, tpu.core_type = #tpu.core_type<tc>, window_params = [{transform_indices = @transform_0, window_bounds = array<i64: 16, 32>}, {transform_indices = @transform_1, window_bounds = array<i64: 32, 64>}, {transform_indices = @transform_2, window_bounds = array<i64: 1, 64>}, {transform_indices = @transform_3, window_bounds = array<i64: 64, 32>}, {transform_indices = @transform_4, window_bounds = array<i64: 16, 32>}]} {
    %c0_i32 = arith.constant 0 : i32
    %0 = arith.cmpi eq, %arg1, %c0_i32 : i32
    %1 = arith.extui %0 : i1 to i32
    %c0_i32_0 = arith.constant 0 : i32
    %2 = arith.cmpi ne, %1, %c0_i32_0 : i32
    scf.if %2 {
      %cst_13 = arith.constant 0.000000e+00 : f32
      %16 = vector.broadcast %cst_13 : f32 to vector<16x32xf32>
      %c0_14 = arith.constant 0 : index
      %c0_15 = arith.constant 0 : index
      %17 = vector.load %arg6[%c0_14, %c0_15] : memref<16x32xf32, #tpu.memory_space<vmem>>, vector<16x32xf32>
      tpu.vector_store %arg6[%c0_14, %c0_15], %16 {strides = array<i32>} : memref<16x32xf32, #tpu.memory_space<vmem>>, vector<16x32xf32>,
    } else {
    }
    %c0 = arith.constant 0 : index
    %c0_1 = arith.constant 0 : index
    %3 = vector.load %arg2[%c0, %c0_1] : memref<16x32xf32, #tpu.memory_space<vmem>>, vector<16x32xf32>
    %4 = arith.truncf %3 : vector<16x32xf32> to vector<16x32xbf16>
    %c0_2 = arith.constant 0 : index
    %c0_3 = arith.constant 0 : index
    %5 = vector.load %arg3[%c0_2, %c0_3] : memref<32x64xbf16, #tpu.memory_space<vmem>>, vector<32x64xbf16>
    %cst = arith.constant dense<0.000000e+00> : vector<16x64xf32>
    %6 = tpu.matmul %4, %5, %cst {dimension_numbers = #tpu.dot_dimension_numbers<[1], [0], [0], [1], [0, 0, 1, 1], [], []>} : vector<16x32xbf16>, vector<32x64xbf16>, vector<16x64xf32> -> vector<16x64xf32>
    %c0_4 = arith.constant 0 : index
    %c0_5 = arith.constant 0 : index
    %7 = vector.load %arg4[%c0_4, %c0_5] : memref<1x64xf32, #tpu.memory_space<vmem>>, vector<1x64xf32>
    %8 = vector.broadcast %7 : vector<1x64xf32> to vector<16x64xf32>
    %9 = arith.addf %6, %8 : vector<16x64xf32>
    %c0_6 = arith.constant 0 : index
    %c0_7 = arith.constant 0 : index
    %10 = vector.load %arg6[%c0_6, %c0_7] : memref<16x32xf32, #tpu.memory_space<vmem>>, vector<16x32xf32>
    %11 = arith.truncf %9 : vector<16x64xf32> to vector<16x64xbf16>
    %c0_8 = arith.constant 0 : index
    %c0_9 = arith.constant 0 : index
    %12 = vector.load %arg5[%c0_8, %c0_9] : memref<64x32xbf16, #tpu.memory_space<vmem>>, vector<64x32xbf16>
    %cst_10 = arith.constant dense<0.000000e+00> : vector<16x32xf32>
    %13 = tpu.matmul %11, %12, %cst_10 {dimension_numbers = #tpu.dot_dimension_numbers<[1], [0], [0], [1], [0, 0, 1, 1], [], []>} : vector<16x64xbf16>, vector<64x32xbf16>, vector<16x32xf32> -> vector<16x32xf32>
    %14 = arith.addf %10, %13 : vector<16x32xf32>
    %c0_11 = arith.constant 0 : index
    %c0_12 = arith.constant 0 : index
    %15 = vector.load %arg6[%c0_11, %c0_12] : memref<16x32xf32, #tpu.memory_space<vmem>>, vector<16x32xf32>
    tpu.vector_store %arg6[%c0_11, %c0_12], %14 {strides = array<i32>} : memref<16x32xf32, #tpu.memory_space<vmem>>, vector<16x32xf32>,
    return
  }
  func.func @transform_0(%arg0: i32, %arg1: i32) -> (i32, i32) {
    %c0_i32 = arith.constant 0 : i32
    %c0_i32_0 = arith.constant 0 : i32
    return %arg0, %c0_i32 : i32, i32
  }
  func.func @transform_1(%arg0: i32, %arg1: i32) -> (i32, i32) {
    %c0_i32 = arith.constant 0 : i32
    %c0_i32_0 = arith.constant 0 : i32
    return %c0_i32, %arg1 : i32, i32
  }
  func.func @transform_2(%arg0: i32, %arg1: i32) -> (i32, i32) {
    %c0_i32 = arith.constant 0 : i32
    %c0_i32_0 = arith.constant 0 : i32
    return %c0_i32, %arg1 : i32, i32
  }
  func.func @transform_3(%arg0: i32, %arg1: i32) -> (i32, i32) {
    %c0_i32 = arith.constant 0 : i32
    %c0_i32_0 = arith.constant 0 : i32
    return %arg1, %c0_i32 : i32, i32
  }
  func.func @transform_4(%arg0: i32, %arg1: i32) -> (i32, i32) {
    %c0_i32 = arith.constant 0 : i32
    %c0_i32_0 = arith.constant 0 : i32
    return %arg0, %c0_i32 : i32, i32
  }
}

</mosaic_0001>

<bundles_post_ra>
// kernel: feed_forward.1
= control target key start
LH: loop header
LB: loop body
LE: loop exit
PB: predicated region body
PF: predicated region fallthrough
CT: control target
= control target key end

     0   :  { %v269_v1 = vmov 0.0   ;;  %vm270_vm0 = vmmov 0   ;;  %vm23_vm1 = vcmask 261120   ;;  %s343_s0 = inlined_call_operand.vmem [shape: f32[16,32], index: 0, kind: input, shape index: {}]   ;;  %s344_s1 = inlined_call_operand.vmem [shape: bf16[32,64], index: 1, kind: input, shape index: {}]   ;;  %s345_s2 = inlined_call_operand.vmem [shape: f32[1,64], index: 2, kind: input, shape index: {}]   ;;  %s346_s3 = inlined_call_operand.vmem [shape: bf16[64,32], index: 3, kind: input, shape index: {}]   ;;  %s347_s4 = inlined_call_operand.hbm [shape: f32[16,32], index: 4, kind: output, shape index: {}]  }
   0x1   :  { %v239_v0 = vld [vmem:[%s344_s1] sm:$0xff]   ;;  %214 = vmatprep.subr.bf16.mxu0 %v269_v1  ;;  %v240_v2 = vld [vmem:[%s344_s1 + $0x8] sm:$0xff]   ;;  %222 = vmatprep.subr.bf16.mxu1 %v269_v1  ;;  %24 = vst.msk [vmem:[#allocation2] sm:$0xff] %vm23_vm1, %v269_v1  ;;  %25 = vst.msk [vmem:[#allocation2 + $0x8] sm:$0xff] %vm23_vm1, %v269_v1 }
   0x2   :  { %215 = vmatpush3.bf16.msra.mxu0 %v239_v0  ;;  %218 = vmatprep.mubr.msk.bf16.mxu0 %vm270_vm0, %v269_v1  ;;  %v26_v3 = vld [vmem:[%s343_s0] sm:$0xff]  ;;  %v27_v4 = vld [vmem:[%s343_s0 + $0x8] sm:$0xff] }
   0x3   :  { %216 = vmatprep.subr.bf16.mxu0 %v269_v1  ;;  %v241_v5 = vld [vmem:[%s346_s3] sm:$0xff]   ;;  %230 = vmatprep.mubr.msk.bf16.mxu1 %vm270_vm0, %v269_v1  ;;  %v242_v6 = vld [vmem:[%s346_s3 + $0x8] sm:$0xff]   ;;  %v28_v7 = vpack.c.bf16 %v27_v4, %v26_v3 }
   0x4   :  { %223 = vmatpush3.bf16.msra.mxu1 %v241_v5 }
   0x5   :  { %224 = vmatprep.subr.bf16.mxu1 %v269_v1 }
   0x6   :  { %217 = vmatpush3.bf16.msra.mxu0 %v240_v2 }
   0x7   :  { %9 = vsyncpa [#allocation3], 0  ;;  %v243_v8 = vld [vmem:[%s346_s3 + $0x10] sm:$0xff]   ;;  %v244_v9 = vld [vmem:[%s346_s3 + $0x18] sm:$0xff]   ;;  %vm132_vm2 = vcmask 523264   ;;  %s271_s5 = smov [#allocation2]  }
   0x8   :  { %225 = vmatpush3.bf16.msra.mxu1 %v242_v6  ;;  %v197_v10 = vld [vmem:[%s345_s2] ss:$0 sm:$0xff]  ;;  %s186_s6 = sshll.u32 %s271_s5, 4  ;;  %v98_v20 = vld [vmem:[#allocation2 + $0x8] sm:$0xff]  ;;  %s187_s6 = int_to_ptr.vmem [resolvable:$true] %s186_s6 }
   0x9   :  { %219 = vmatmul.mubr.msk.bf16.vlgmr.msra.gmra.mrb[0].mxu0 %vm23_vm1, %v28_v7  ;;  %226 = vmatprep.subr.bf16.mxu1 %v269_v1  ;;  %v97_v18 = vld [vmem:[#allocation2] sm:$0xff]  ;;  %s245_s2 = scalar_lea.vmem %s187_s6, 256  ;;  %p250_p1 = scmp.lt.s32.totalorder %s187_s6, %s187_s6 }
   0xa   :  { %p246_p0 = scmp.ne.s32.totalorder %s187_s6, %s245_s2  ;;  %p251_p2 = scmp.lt.s32.totalorder %s245_s2, %s245_s2 }
   0xc   :  { %227 = vmatpush3.bf16.msra.mxu1 %v243_v8  ;;  %p252_p3 = por %p251_p2, %p250_p1 }
   0xd   :  { %228 = vmatprep.subr.bf16.mxu1 %v269_v1 }
   0xe   :  { %p253_p4 = pnand %p252_p3, %p246_p0 }
  0x10   :  { %229 = vmatpush3.bf16.msra.mxu1 %v244_v9 }
  0xdc   :  { %v90_v11 = vpop.f32.mrb[0].mxu0 }
  0xdd   :  { %v220_v12 = vpop.f32.mrb[1].mxu0  ;;  %v91_v14 = vadd.f32 %v197_v10, %v90_v11 }
  0xde   :  { %v93_v13 = vpop.f32.mrb[2].mxu0 }
  0xdf   :  { %v94_v15 = vadd.f32 %v197_v10, %v93_v13  ;;  %v221_v16 = vpop.f32.mrb[3].mxu0 }
  0xe1   :  { %v99_v17 = vpack.c.bf16 %v94_v15, %v91_v14 }
  0xe3   :  { %231 = vmatmul.mubr.msk.bf16.vlgmr.msra.gmra.mrb[0].mxu1 %vm132_vm2, %v99_v17 }
 0x1b6   :  { %v170_v19 = vpop.f32.mrb[0].mxu1 }
 0x1b7   :  { %v177_v21 = vadd.f32 %v170_v19, %v97_v18  ;;  %v232_v22 = vpop.f32.mrb[1].mxu1 }
 0x1b8   :  { %v173_v23 = vpop.f32.mrb[2].mxu1 }
 0x1b9   :  { %179 = vst.msk [vmem:[#allocation2] sm:$0xff] %vm23_vm1, %v177_v21  ;;  %v178_v24 = vadd.f32 %v173_v23, %v98_v20  ;;  %v233_v25 = vpop.f32.mrb[3].mxu1 }
 0x1bb   :  { %180 = vst.msk [vmem:[#allocation2 + $0x8] sm:$0xff] %vm23_vm1, %v178_v24 }
 0x1bc   :  { %256 = shalt.err (!%p253_p4)
}
 0x1bd   :  { %s257_s8 = scalar_lea.hbm %s347_s4, 256 }
 0x1be   :  { %p258_p5 = scmp.ne.s32.totalorder %s347_s4, %s257_s8  ;;  %p261_p6 = scmp.lt.u32.totalorder %s257_s8, %s347_s4 }
 0x1c0   :  { %p263_p7 = pnand %p261_p6, %p258_p5 }
 0x1c2   :  { %266 = shalt.err (!%p263_p7)
}
 0x1c3   :  { %s272_s13 = smov 128   ;;  %s273_s14 = smov 8  }
 0x1c4   :  { %192 = dma.vmem_to_hbm [thread:$0]  %s187_s6, 256, %s347_s4, [#allocation3], %s272_s13, %s272_s13, %s273_s14  }
 0x1c5   :  { %267 = dma.done.wait [#allocation3], 256  }
 0x1c6   :  { %268 = vsyncadd [#allocation3], 4294967040 }
 0x1c7   :  { %196 = vsyncpa [#allocation3], 1 }

</bundles_post_ra>
